<compile_context>
chip_gen: v7x
topology: tpu7x:2x2x1
jax: 0.10.0
libtpu: 0.0.40
codegen_flags: <defaults>
</compile_context>

<pallas_src>
import functools
import math

import jax
import jax.numpy as jnp
from jax import lax
from jax.experimental import pallas as pl
from jax.experimental.pallas import tpu as pltpu


def _round_up(n, m):
    return ((n + m - 1) // m) * m


# ---------------------------------------------------------------------------
# Pass 1: per-tile partial sums for global BatchNorm statistics.
# ---------------------------------------------------------------------------
def _fc1_stats_kernel(x_ref, w1_ref, b1_ref, stats_ref, *, batch, block_b):
    # x_ref: (10, TB)   w1_ref: (6, 10)   b1_ref: (6, 1)
    # stats_ref block: (1, 6, 128); lane 0 = sum(h), lane 1 = sum(h*h).
    h = jnp.dot(w1_ref[...], x_ref[...], preferred_element_type=jnp.float32)
    h = jnp.maximum(h + b1_ref[...], 0.0)                       # ReLU, (6, TB)
    # Mask padded batch columns so the statistics stay exact.
    col = pl.program_id(0) * block_b + lax.broadcasted_iota(jnp.int32, h.shape, 1)
    h = jnp.where(col < batch, h, 0.0)
    s = jnp.sum(h, axis=1, keepdims=True)                       # (6, 1)  XLU lane-reduce
    sq = jnp.sum(h * h, axis=1, keepdims=True)                  # (6, 1)
    lane = lax.broadcasted_iota(jnp.int32, (6, 128), 1)
    stats_ref[0] = jnp.where(lane == 0, s, 0.0) + jnp.where(lane == 1, sq, 0.0)


# ---------------------------------------------------------------------------
# Pass 2: fc1 -> ReLU -> (folded BatchNorm + fc2) -> sigmoid.
# ---------------------------------------------------------------------------
def _norm_fc2_kernel(x_ref, w1_ref, b1_ref, w2eff_ref, b2eff_ref, o_ref):
    # x_ref: (10, TB)   w1_ref: (6, 10)   b1_ref: (6, 1)
    # w2eff_ref: (6, 1) = fc2.weight * gamma / sqrt(var + eps)   (constant fold)
    # b2eff_ref: (1, 1) = fc2.bias + sum_f fc2.weight_f * (beta_f - mean_f*scale_f)
    h = jnp.dot(w1_ref[...], x_ref[...], preferred_element_type=jnp.float32)
    h = jnp.maximum(h + b1_ref[...], 0.0)                       # (6, TB)
    # fc2 (+ folded BN) as VPU multiply + XLU sublane reduce; a (*,6)x(6,1)
    # MXU matmul would waste the systolic array and the result-FIFO latency.
    y = jnp.sum(h * w2eff_ref[...], axis=0, keepdims=True) + b2eff_ref[...]  # (1, TB)
    # Numerically stable sigmoid: exp on the EUP slot, single divide.
    e = jnp.exp(-jnp.abs(y))
    o_ref[...] = jnp.where(y >= 0.0, 1.0, e) / (1.0 + e)


# ---------------------------------------------------------------------------
# Wrapper
# ---------------------------------------------------------------------------
def network2l_forward(x, w1, b1, gamma, beta, w2, b2, *,
                      block_b=512, eps=1e-5, apply_batch_norm=True):
    """Forward pass of Network2l (activation = ReLU, BatchNorm in training mode).

    x:     (B, 10) float32 (PyTorch layout)
    w1:    (6, 10) fc1.weight     b1: (6,)  fc1.bias
    gamma: (6,)    BN weight      beta: (6,) BN bias
    w2:    (1, 6)  fc2.weight     b2: (1,)  fc2.bias
    Returns (B, 1) float32.
    """
    B = x.shape[0]
    x = x.astype(jnp.float32)
    w1 = w1.astype(jnp.float32)
    gamma = gamma.astype(jnp.float32)
    beta = beta.astype(jnp.float32)

    # Batch tile on the lane axis: multiple of 128, capped at block_b.
    tb = min(block_b, _round_up(B, 128))
    Bp = _round_up(B, tb)
    nb = Bp // tb

    # One-time layout change: features on sublanes, batch on lanes.
    xt = jnp.pad(x.T, ((0, 0), (0, Bp - B)))                    # (10, Bp)
    b1c = b1.reshape(6, 1).astype(jnp.float32)

    parallel = pltpu.CompilerParams(dimension_semantics=("parallel",))

    if apply_batch_norm:
        # ---- pass 1: global batch statistics of relu(fc1(x)) --------------
        stats = pl.pallas_call(
            functools.partial(_fc1_stats_kernel, batch=B, block_b=tb),
            out_shape=jax.ShapeDtypeStruct((nb, 6, 128), jnp.float32),
            grid=(nb,),
            in_specs=[pl.BlockSpec((10, tb), lambda i: (0, i)),
                      pl.BlockSpec((6, 10), lambda i: (0, 0)),
                      pl.BlockSpec((6, 1), lambda i: (0, 0))],
            out_specs=pl.BlockSpec((1, 6, 128), lambda i: (i, 0, 0)),
            compiler_params=parallel,
        )(xt, w1, b1c)

        sums = jnp.sum(stats[:, :, 0], axis=0)                  # (6,)
        sqs = jnp.sum(stats[:, :, 1], axis=0)                   # (6,)
        mean = sums / B
        var = jnp.maximum(sqs / B - mean * mean, 0.0)           # biased (training mode)
        scale = gamma / jnp.sqrt(var + eps)                     # (6,)
        shift = beta - mean * scale                             # (6,)
    else:
        scale = jnp.ones((6,), jnp.float32)
        shift = jnp.zeros((6,), jnp.float32)

    # One-time constant fold of BN normalize+affine into fc2 parameters.
    w2v = w2.reshape(6).astype(jnp.float32)
    w2eff = (w2v * scale).reshape(6, 1)
    b2eff = (jnp.sum(w2v * shift) + b2.astype(jnp.float32).reshape(())).reshape(1, 1)

    # ---- pass 2: fc1 -> ReLU -> folded BN + fc2 -> sigmoid -----------------
    out = pl.pallas_call(
        _norm_fc2_kernel,
        out_shape=jax.ShapeDtypeStruct((1, Bp), jnp.float32),
        grid=(nb,),
        in_specs=[pl.BlockSpec((10, tb), lambda i: (0, i)),
                  pl.BlockSpec((6, 10), lambda i: (0, 0)),
                  pl.BlockSpec((6, 1), lambda i: (0, 0)),
                  pl.BlockSpec((6, 1), lambda i: (0, 0)),
                  pl.BlockSpec((1, 1), lambda i: (0, 0))],
        out_specs=pl.BlockSpec((1, tb), lambda i: (0, i)),
        compiler_params=parallel,
    )(xt, w1, b1c, w2eff, b2eff)

    return out[:, :B].T                                          # (B, 1)


# ---------------------------------------------------------------------------
# Pure-JAX reference (matches PyTorch forward in training mode).
# ---------------------------------------------------------------------------
def network2l_reference(x, w1, b1, gamma, beta, w2, b2, eps=1e-5):
    h = x @ w1.T + b1
    h = jnp.maximum(h, 0.0)
    mean = jnp.mean(h, axis=0)
    var = jnp.mean((h - mean) ** 2, axis=0)       # biased variance (training BN)
    h = (h - mean) / jnp.sqrt(var + eps) * gamma + beta
    y = h @ w2.T + b2
    return jax.nn.sigmoid(y)


def init_params(key):
    """PyTorch-style init (uniform(-1/sqrt(fan_in), 1/sqrt(fan_in)) for Linear).
    BatchNorm1d initializes gamma=1, beta=0; here small random perturbations
    are used so the affine fold is actually exercised by the check."""
    k1, k2, k3, k4, k5, k6 = jax.random.split(key, 6)
    bound1 = 1.0 / math.sqrt(10.0)
    w1 = jax.random.uniform(k1, (6, 10), jnp.float32, -bound1, bound1)   # fc1.weight
    b1 = jax.random.uniform(k2, (6,), jnp.float32, -bound1, bound1)      # fc1.bias
    bound2 = 1.0 / math.sqrt(6.0)
    w2 = jax.random.uniform(k3, (1, 6), jnp.float32, -bound2, bound2)    # fc2.weight
    b2 = jax.random.uniform(k4, (1,), jnp.float32, -bound2, bound2)      # fc2.bias
    gamma = 1.0 + 0.1 * jax.random.normal(k5, (6,), jnp.float32)
    beta = 0.1 * jax.random.normal(k6, (6,), jnp.float32)
    return w1, b1, gamma, beta, w2, b2


if __name__ == "__main__":
    key = jax.random.PRNGKey(0)
    kx, kp = jax.random.split(key)
    w1, b1, gamma, beta, w2, b2 = init_params(kp)

    # (B, block_b): multi-tile grid with ragged batch, and a tiny single-tile case.
    for B, blk in ((600, 256), (8, 512)):
        x = jax.random.normal(jax.random.fold_in(kx, B), (B, 10), jnp.float32)
        out = network2l_forward(x, w1, b1, gamma, beta, w2, b2, block_b=blk)
        out = jax.block_until_ready(out)
        ref = network2l_reference(x, w1, b1, gamma, beta, w2, b2)

        assert out.shape == (B, 1)
        assert bool(jnp.all(jnp.isfinite(out)))
        assert bool(jnp.all((out > 0.0) & (out < 1.0)))
        err = float(jnp.max(jnp.abs(out - ref)))
        assert err < 1e-4, f"max abs err {err} at B={B}"

    print("KERNEL_OK")
</pallas_src>

<mosaic_0001>
module attributes {stable_mosaic.version = 11 : i64} {
  func.func @_fc1_stats_kernel(%arg0: i32, %arg1: memref<10x256xf32, #tpu.memory_space<vmem>>, %arg2: memref<6x10xf32, #tpu.memory_space<vmem>>, %arg3: memref<6x1xf32, #tpu.memory_space<vmem>>, %arg4: memref<1x6x128xf32, #tpu.memory_space<vmem>>) attributes {dimension_semantics = [#tpu.dimension_semantics<parallel>], iteration_bounds = array<i64: 3>, scalar_prefetch = 0 : i64, scratch_operands = 0 : i64, tpu.core_type = #tpu.core_type<tc>, window_params = [{transform_indices = @transform_0, window_bounds = array<i64: 10, 256>}, {pipeline_mode = #tpu.pipeline_mode<synchronous>, transform_indices = @transform_1, window_bounds = array<i64: 6, 10>}, {pipeline_mode = #tpu.pipeline_mode<synchronous>, transform_indices = @transform_2, window_bounds = array<i64: 6, 1>}, {transform_indices = @transform_3, window_bounds = array<i64: 1, 6, 128>}]} {
    %c0 = arith.constant 0 : index
    %c0_0 = arith.constant 0 : index
    %0 = vector.load %arg2[%c0, %c0_0] : memref<6x10xf32, #tpu.memory_space<vmem>>, vector<6x10xf32>
    %c0_1 = arith.constant 0 : index
    %c0_2 = arith.constant 0 : index
    %1 = vector.load %arg1[%c0_1, %c0_2] : memref<10x256xf32, #tpu.memory_space<vmem>>, vector<10x256xf32>
    %cst = arith.constant dense<0.000000e+00> : vector<6x256xf32>
    %2 = tpu.matmul %0, %1, %cst {dimension_numbers = #tpu.dot_dimension_numbers<[1], [0], [0], [1], [0, 0, 1, 1], [], []>} : vector<6x10xf32>, vector<10x256xf32>, vector<6x256xf32> -> vector<6x256xf32>
    %c0_3 = arith.constant 0 : index
    %c0_4 = arith.constant 0 : index
    %3 = vector.load %arg3[%c0_3, %c0_4] : memref<6x1xf32, #tpu.memory_space<vmem>>, vector<6x1xf32>
    %4 = vector.broadcast %3 : vector<6x1xf32> to vector<6x256xf32>
    %5 = arith.addf %2, %4 : vector<6x256xf32>
    %cst_5 = arith.constant 0.000000e+00 : f32
    %6 = vector.broadcast %cst_5 : f32 to vector<6x256xf32>
    %7 = arith.maximumf %5, %6 : vector<6x256xf32>
    %c256_i32 = arith.constant 256 : i32
    %8 = arith.muli %arg0, %c256_i32 : i32
    %9 = tpu.iota {dimensions = array<i32: 1>} : vector<6x256xi32>
    %10 = vector.broadcast %8 : i32 to vector<6x256xi32>
    %11 = arith.addi %10, %9 : vector<6x256xi32>
    %c600_i32 = arith.constant 600 : i32
    %12 = vector.broadcast %c600_i32 : i32 to vector<6x256xi32>
    %13 = arith.cmpi slt, %11, %12 : vector<6x256xi32>
    %cst_6 = arith.constant 0.000000e+00 : f32
    %14 = vector.broadcast %cst_6 : f32 to vector<6x256xf32>
    %15 = arith.select %13, %7, %14 : vector<6x256xi1>, vector<6x256xf32>
    %cst_7 = arith.constant dense<0.000000e+00> : vector<6xf32>
    %16 = vector.multi_reduction <add>, %15, %cst_7 [1] : vector<6x256xf32> to vector<6xf32>
    %17 = vector.shape_cast %16 : vector<6xf32> to vector<6x1xf32>
    %18 = arith.mulf %15, %15 : vector<6x256xf32>
    %cst_8 = arith.constant dense<0.000000e+00> : vector<6xf32>
    %19 = vector.multi_reduction <add>, %18, %cst_8 [1] : vector<6x256xf32> to vector<6xf32>
    %20 = vector.shape_cast %19 : vector<6xf32> to vector<6x1xf32>
    %21 = tpu.iota {dimensions = array<i32: 1>} : vector<6x128xi32>
    %c0_i32 = arith.constant 0 : i32
    %22 = vector.broadcast %c0_i32 : i32 to vector<6x128xi32>
    %23 = arith.cmpi eq, %21, %22 : vector<6x128xi32>
    %cst_9 = arith.constant 0.000000e+00 : f32
    %24 = vector.shape_cast %17 : vector<6x1xf32> to vector<6x1xf32>
    %25 = vector.broadcast %24 : vector<6x1xf32> to vector<6x128xf32>
    %26 = vector.broadcast %cst_9 : f32 to vector<6x128xf32>
    %27 = arith.select %23, %25, %26 : vector<6x128xi1>, vector<6x128xf32>
    %c1_i32 = arith.constant 1 : i32
    %28 = vector.broadcast %c1_i32 : i32 to vector<6x128xi32>
    %29 = arith.cmpi eq, %21, %28 : vector<6x128xi32>
    %cst_10 = arith.constant 0.000000e+00 : f32
    %30 = vector.shape_cast %20 : vector<6x1xf32> to vector<6x1xf32>
    %31 = vector.broadcast %30 : vector<6x1xf32> to vector<6x128xf32>
    %32 = vector.broadcast %cst_10 : f32 to vector<6x128xf32>
    %33 = arith.select %29, %31, %32 : vector<6x128xi1>, vector<6x128xf32>
    %34 = arith.addf %27, %33 : vector<6x128xf32>
    %c0_11 = arith.constant 0 : index
    %c0_12 = arith.constant 0 : index
    %c0_13 = arith.constant 0 : index
    %35 = vector.load %arg4[%c0_11, %c0_12, %c0_13] : memref<1x6x128xf32, #tpu.memory_space<vmem>>, vector<1x6x128xf32>
    %36 = vector.shape_cast %35 : vector<1x6x128xf32> to vector<6x128xf32>
    %37 = vector.shape_cast %34 : vector<6x128xf32> to vector<1x6x128xf32>
    tpu.vector_store %arg4[%c0_11, %c0_12, %c0_13], %37 {strides = array<i32>} : memref<1x6x128xf32, #tpu.memory_space<vmem>>, vector<1x6x128xf32>,
    return
  }
  func.func @transform_0(%arg0: i32) -> (i32, i32) {
    %c0_i32 = arith.constant 0 : i32
    %c0_i32_0 = arith.constant 0 : i32
    return %c0_i32, %arg0 : i32, i32
  }
  func.func @transform_1(%arg0: i32) -> (i32, i32) {
    %c0_i32 = arith.constant 0 : i32
    %c0_i32_0 = arith.constant 0 : i32
    %c0_i32_1 = arith.constant 0 : i32
    return %c0_i32, %c0_i32_0 : i32, i32
  }
  func.func @transform_2(%arg0: i32) -> (i32, i32) {
    %c0_i32 = arith.constant 0 : i32
    %c0_i32_0 = arith.constant 0 : i32
    %c0_i32_1 = arith.constant 0 : i32
    return %c0_i32, %c0_i32_0 : i32, i32
  }
  func.func @transform_3(%arg0: i32) -> (i32, i32, i32) {
    %c0_i32 = arith.constant 0 : i32
    %c0_i32_0 = arith.constant 0 : i32
    %c0_i32_1 = arith.constant 0 : i32
    return %arg0, %c0_i32, %c0_i32_0 : i32, i32, i32
  }
}

</mosaic_0001>

<bundles_post_ra>
// kernel: tpu_custom_call.1
= control target key start
LH: loop header
LB: loop body
LE: loop exit
PB: predicated region body
PF: predicated region fallthrough
CT: control target
= control target key end

     0   :  { %8 = vsyncpa [#allocation3], 0  ;;  %s770_s0 = inlined_call_operand.hbm [shape: f32[10,768], index: 0, kind: input, shape index: {}]   ;;  %s771_s1 = inlined_call_operand.vmem [shape: f32[6,10], index: 1, kind: input, shape index: {}]   ;;  %s772_s2 = inlined_call_operand.vmem [shape: f32[6,1], index: 2, kind: input, shape index: {}]   ;;  %s773_s3 = inlined_call_operand.hbm [shape: f32[3,6,128], index: 3, kind: output, shape index: {}]  }
   0x1   :  { %10 = vsyncpa [#allocation3 + $0x1], 0 }
   0x2   :  { %11 = vsyncpa [#allocation4], 0 }
   0x3   :  { %13 = vsyncpa [#allocation4 + $0x1], 0  ;;  %s602_s12 = smov 0   ;;  %s604_s13 = smov 0  }
   0x4   :  { %s606_s14 = smov 0   ;;  %s608_s15 = smov 0  }
   0x5 LB: > { %s623_s16 = sadd.s32 4294967295, %s572_s15   ;;  %s399_s17 = sadd.s32 4294967294, %s572_s15   ;;  %s572_s15 = sphi %s608_s15, %s786_s15   ;;  %s568_s14 = sphi %s606_s14, %s785_s14   ;;  %s564_s13 = sphi %s604_s13, %s784_s13   ;;  %s560_s12 = sphi %s602_s12, %s783_s12  }
   0x6   : > { %s627_s18 = sadd.s32 1, %s572_s15   ;;  %s26_s19 = sadd.s32 1, %s568_s14 }
   0x7   : > { %s23_s20 = ssub.s32 %s572_s15, %s627_s18  ;;  %p33_p0 = scmp.ne.s32.totalorder %s568_s14, %s564_s13 }
   0x8   : > { %p24_p1 = scmp.eq.s32.totalorder %s23_s20, 0  ;;  %p34_p2 = scmp.eq.s32.totalorder %s572_s15, 0 }
   0x9   : > { %p39_p3 = scmp.ne.s32.totalorder %s564_s13, %s560_s12  ;;  %p40_p4 = scmp.eq.s32.totalorder %s623_s16, 0 }
   0xa   : > { %s639_s21 = scalar_select %p24_p1, %s568_s14, %s26_s19  }
   0xb   : > { %p641_p5 = por %p34_p2, %p33_p0  ;;  %p645_p6 = por %p40_p4, %p39_p3 }
   0xc   : > { %p105_p7 = scmp.eq.s32.totalorder %s623_s16, 2  ;;  %p111_p8 = scmp.eq.s32.totalorder %s399_s17, 2 }
   0xd   : > { %p435_p9 = scmp.lt.s32.totalorder %s572_s15, 3  ;;  %s137_s26 = sand.u32 1, %s568_s14  }
   0xe   : > { %p651_p10 = por %p105_p7, %p33_p0  ;;  %p655_p11 = por %p111_p8, %p39_p3 }
   0xf   : > { %s416_s27 = sshll.u32 %s572_s15, 8  ;;  %s402_s28 = sshll.u32 %s137_s26, 5 }
  0x10   : > { %s777_s24 = scalar_select %p651_p10, 1, 0 }
  0x11   : > { %s778_s25 = scalar_select %p655_p11, 1, 0 }
  0x12   : > { %s664_s4 = scalar_lea.hbm %s770_s0, %s416_s27  ;;  %s141_s5 = scalar_lea.vmem [#allocation2], %s402_s28 }
  0x13   : > { %s148_s6 = sshll.u32 %s141_s5, 4  ;;  %p668_p12 = pnand %p435_p9, %p641_p5  ;;  %s672_s6 = int_to_ptr.vmem [resolvable:$true] %s148_s6 }
  0x14   : > { %s675_s8 = scalar_lea.sflag [#allocation3], %s137_s26  ;;  %s476_s9 = scalar_lea.hbm %s664_s4, 512 }
  0x15   : > { %p477_p0 = scmp.ne.s32.totalorder %s664_s4, %s476_s9  ;;  %p478_p1 = pneg %p668_p12 }
  0x16   : > { %s481_s17 = scalar_lea.hbm %s770_s0, 1536  ;;  %p482_p4 = scmp.lt.u32.totalorder %s664_s4, %s770_s0 }
  0x17   : > { %p479_p2 = pnand %p478_p1, %p477_p0  ;;  %p483_p5 = scmp.lt.u32.totalorder %s481_s17, %s476_s9 }
  0x18   : > { %p485_p8 = scmp.lt.u32.totalorder %s476_s9, %s664_s4 }
  0x19   : > { %p480_p3 = pneg %p479_p2  ;;  %p484_p7 = por %p483_p5, %p482_p4 }
  0x1b   : > { %p486_p9 = por %p485_p8, %p484_p7 }
  0x1d   : > { %p487_p13 = pnand %p486_p9, %p480_p3 }
  0x1f   : > { %490 = shalt.err (!%p487_p13)
}
  0x20   : > { %s491_s22 = scalar_lea.vmem %s672_s6, 512  ;;  %s574_s26 = smov [#allocation2]  }
  0x21   : > { %p492_p0 = scmp.ne.s32.totalorder %s672_s6, %s491_s22  ;;  %s496_s27 = sshll.u32 %s574_s26, 4  ;;  %s497_s27 = int_to_ptr.vmem [resolvable:$false] %s496_s27 }
  0x22   : > { %s498_s28 = scalar_lea.vmem %s497_s27, 1024  ;;  %p499_p10 = scmp.lt.s32.totalorder %s672_s6, %s497_s27 }
  0x23   : > { %p494_p2 = pnand %p492_p0, %p478_p1  ;;  %p500_p4 = scmp.lt.s32.totalorder %s498_s28, %s491_s22 }
  0x25   : > { %p495_p11 = pneg %p494_p2  ;;  %p501_p5 = por %p500_p4, %p499_p10 }
  0x27   : > { %p502_p7 = pnand %p501_p5, %p495_p11 }
  0x29   : > { %505 = shalt.err (!%p502_p7)
}
  0x2a   : > { %s575_s29 = smov 768   ;;  %s576_s30 = smov 256  }
  0x2b   : > { %s577_s5 = smov 16   ;;  %p156_p13 = scmp.lt.s32.totalorder %s572_s15, 4 }
  0x2c   : > { %430 = dma.hbm_to_vmem [thread:$0]  (!%p668_p12), %s664_s4, 512, %s672_s6, %s675_s8, %s575_s29, %s576_s30, %s577_s5  }
  0x2d   : > { %p780_p1 = scmp.ge.s32.totalorder %s572_s15, 1 }
  0x2f   : > { %p157_p3 = pnand %p780_p1, %p156_p13 }
  0x30   : > { %s707_s9 = sand.u32 (!%p157_p3), 1, %s564_s13  }
  0x31   : > { %160 = sbr.rel (%p157_p3) target bundleno = 447 (0x1bf), region = 32  ;;  %s406_s10 = sshll.u32 (!%p157_p3), %s707_s9, 5 }
  0x32   : > { %s163_s11 = scalar_lea.sflag (!%p157_p3), [#allocation3], %s707_s9  ;;  %s166_s17 = scalar_lea.vmem (!%p157_p3), [#allocation2], %s406_s10 }
  0x38   : > { %551 = dma.done.wait (%p645_p6), %s163_s11, 512  }
  0x39   : > { %553 = vsyncadd (%p645_p6), %s163_s11, 4294966784  ;;  %v578_v0 = vmov 0.0   ;;  %v579_v1 = vmov 0   ;;  %vm205_vm0 = vcmask 1041408   ;;  %vm580_vm1 = vmmov 1   ;;  %v192_v2 = vld [vmem:[%s166_s17 + $0x8] sm:$0xff] }
  0x3a   : > { %276 = vmatprep.mubr.f32.mxu0 %v578_v0  ;;  %475 = vset.pattern.permute.xlu0 %v579_v1  ;;  %vm418_vm2 = vmpackc.low %vm205_vm0, %vm580_vm1  ;;  %v194_v3 = vld [vmem:[%s166_s17 + $0x18] sm:$0x3]  ;;  %v191_v4 = vld [vmem:[%s166_s17] sm:$0xff]  ;;  %vm201_vm3 = vcmask 80896   ;;  %v286_v10 = vlaneseq  ;;  %s411_s8 = sshll.u32 %s623_s16, 8  ;;  %vm296_vm6 = vcmask 1045504  }
  0x3b   : > { %v417_v5 = vpack.c.bf16 %v194_v3, %v192_v2  ;;  %v193_v6 = vld [vmem:[%s166_s17 + $0x10] sm:$0x3]  ;;  %v195_v7 = vld [vmem:[%s772_s2] sm:$0x3f]  ;;  %v289_v12 = vstv %s411_s8  ;;  %s407_s19 = sshll.u32 %s707_s9, 3  ;;  %s413_s20 = sshll.u32 %s623_s16, 7 }
  0x3c   : > { %v420_v8 = vpack.c.bf16 %v193_v6, %v191_v4  ;;  %198 = vperm.xlu0 %475, %v195_v7   ;;  %v190_v9 = vld [vmem:[%s771_s1] sm:$0x3f]  ;;  %v287_v11 = vand.u32 127, %v286_v10  ;;  %s188_s22 = scalar_lea.vmem [#allocation5], %s407_s19  ;;  %s727_s29 = scalar_lea.hbm %s773_s3, %s413_s20 }
  0x3d   : > { %419 = vmatprep.subr.msk.bf16.mxu0 %vm418_vm2, %v417_v5  ;;  %s329_s26 = sshll.u32 %s188_s22, 4  ;;  %s316_s30 = scalar_lea.sflag [#allocation4], %s707_s9  ;;  %s729_s26 = int_to_ptr.vmem [resolvable:$true] %s329_s26 }
  0x3e   : > { %422 = vmatpush1.bf16.msk.msra.mxu0 %vm418_vm2, %v420_v8  ;;  %v288_v13 = vadd.s32 128, %v287_v11  ;;  %v290_v15 = vadd.s32 %v289_v12, %v287_v11  ;;  %vm309_vm7 = vcmp.eq.s32.totalorder %v287_v11, 0  ;;  %vm311_vm8 = vcmp.eq.s32.totalorder %v287_v11, 1  ;;  %s506_s5 = scalar_lea.vmem %s729_s26, 128  ;;  %p781_p10 = scmp.ne.s32.totalorder %s777_s24, 0 }
  0x3f   : > { %p507_p6 = scmp.ne.s32.totalorder %s729_s26, %s506_s5  ;;  %s581_s16 = smov [#allocation5]  }
  0x40   : > { %v291_v16 = vadd.s32 %v289_v12, %v288_v13  ;;  %vm292_vm4 = vcmp.lt.s32.totalorder %v290_v15, 600  ;;  %s510_s10 = sshll.u32 %s581_s16, 4  ;;  %s511_s10 = int_to_ptr.vmem [resolvable:$false] %s510_s10 }
  0x41   : > { %410 = vmatmul.mubr.msk.f32.vlgmr.msra.gmra.mrb[0].mxu0 %vm201_vm3, %v190_v9  ;;  %p508_p11 = pnand %p507_p6, %p781_p10  ;;  %s512_s11 = scalar_lea.vmem %s511_s10, 256 }
  0x42   : > { %vm293_vm5 = vcmp.lt.s32.totalorder %v291_v16, 600  ;;  %p513_p8 = scmp.lt.s32.totalorder %s729_s26, %s511_s10  ;;  %p514_p9 = scmp.lt.s32.totalorder %s512_s11, %s506_s5 }
  0x43   : > { %p509_p12 = pneg %p508_p11 }
  0x44   : > { %p515_p0 = por %p514_p9, %p513_p8 }
  0x46   : > { %p516_p2 = pnand %p515_p0, %p509_p12 }
  0xbb   : > { %v199_v14 = vpop.permute.xlu0 %198 }
 0x114   : > { %v278_v17 = vpop.f32.mrb[0].mxu0 }
 0x115   : > { %v279_v18 = vadd.f32 %v278_v17, %v199_v14  ;;  %v280_v19 = vpop.f32.mrb[1].mxu0 }
 0x116   : > { %v281_v20 = vadd.f32 %v280_v19, %v199_v14 }
 0x117   : > { %v283_v21 = vmax.f32 %v279_v18, 0.0 }
 0x118   : > { %v284_v22 = vmax.f32 %v281_v20, 0.0 }
 0x119   : > { %v294_v23 = vsel %vm292_vm4, %v283_v21, 0.0 }
 0x11a   : > { %v295_v24 = vsel %vm293_vm5, %v284_v22, 0.0  ;;  %v297_v25 = vsel %vm296_vm6, %v294_v23, 0.0  ;;  %v302_v26 = vmul.f32 %v294_v23, %v294_v23 }
 0x11b   : > { %v298_v27 = vsel %vm296_vm6, %v295_v24, 0.0  ;;  %v303_v28 = vmul.f32 %v295_v24, %v295_v24 }
 0x11c   : > { %v299_v29 = vadd.f32 %v298_v27, %v297_v25  ;;  %v304_v30 = vsel %vm296_vm6, %v302_v26, 0.0 }
 0x11d   : > { %v305_v31 = vsel %vm296_vm6, %v303_v28, 0.0 }
 0x11e   : > { %300 = vadd.xlane.f32.xlu0 %v299_v29  ;;  %v306_v32 = vadd.f32 %v305_v31, %v304_v30 }
 0x120   : > { %307 = vadd.xlane.f32.xlu1 %v306_v32 }
 0x1ab   : > { %v301_v33 = vpop.xlane.xlu0 %300 }
 0x1ac   : > { %v310_v35 = vsel %vm309_vm7, %v301_v33, 0.0 }
 0x1ad   : > { %v308_v34 = vpop.xlane.xlu1 %307 }
 0x1ae   : > { %v312_v36 = vsel %vm311_vm8, %v308_v34, 0.0 }
 0x1af   : > { %v313_v37 = vadd.f32 %v312_v36, %v310_v35 }
 0x1b1   : > { %314 = vst [vmem:[%s188_s22] sm:$0x3f] %v313_v37 }
 0x1b2   : > { %519 = shalt.err (!%p516_p2)
}
 0x1b3   : > { %s520_s9 = scalar_lea.hbm %s727_s29, 128  ;;  %s524_s6 = scalar_lea.hbm %s773_s3, 384 }
 0x1b4   : > { %p521_p4 = scmp.ne.s32.totalorder %s727_s29, %s520_s9  ;;  %p525_p13 = scmp.lt.u32.totalorder %s727_s29, %s773_s3 }
 0x1b5   : > { %p526_p1 = scmp.lt.u32.totalorder %s524_s6, %s520_s9  ;;  %p528_p6 = scmp.lt.u32.totalorder %s520_s9, %s727_s29 }
 0x1b6   : > { %p522_p5 = pnand %p521_p4, %p781_p10 }
 0x1b7   : > { %p527_p3 = por %p526_p1, %p525_p13 }
 0x1b8   : > { %p523_p7 = pneg %p522_p5 }
 0x1b9   : > { %p529_p11 = por %p528_p6, %p527_p3 }
 0x1bb   : > { %p530_p12 = pnand %p529_p11, %p523_p7 }
 0x1bd   : > { %533 = shalt.err (!%p530_p12)
}
 0x1be   : > { %425 = dma.vmem_to_hbm [thread:$0]  (%p781_p10), %s729_s26, 128, %s727_s29, %s316_s30  }
 0x1bf PF: > { %p436_p8 = scmp.ge.s32.totalorder %s572_s15, 2  ;;  %s341_s8 = sand.u32 1, %s560_s12  }
 0x1c0   : > { %p782_p9 = scmp.ne.s32.totalorder %s778_s25, 0  ;;  %s342_s19 = scalar_lea.sflag [#allocation4], %s341_s8 }
 0x1c2   : > { %p432_p0 = pnand %p436_p8, %p782_p9 }
 0x1c4   : > { %555 = dma.done.wait (!%p432_p0), %s342_s19, 128  }
 0x1c5   : > { %557 = vsyncadd (!%p432_p0), %s342_s19, 4294967168  ;;  %p16_p2 = scmp.ge.s32.totalorder %s627_s18, 5   ;;  %s783_s12 = smov %s564_s13 }
 0x1c6   : > { %s784_s13 = smov %s568_s14  ;;  %s785_s14 = smov %s639_s21 }
 0x1c7   : > { %s786_s15 = smov %s627_s18  ;;  %18 = sbr.rel (!%p16_p2) target bundleno = 5 (0x5), region = 77 }
 0x1ce   :  { %347 = vsyncpa [#allocation3], 1 }
 0x1cf   :  { %349 = vsyncpa [#allocation3 + $0x1], 1 }
 0x1d0   :  { %350 = vsyncpa [#allocation4], 1 }
 0x1d1   :  { %352 = vsyncpa [#allocation4 + $0x1], 1 }

</bundles_post_ra>
